<compile_context>
chip_gen: v7x
topology: tpu7x:2x2x1
jax: 0.10.0
libtpu: 0.0.40
codegen_flags: <defaults>
</compile_context>

<pallas_src>
import numpy as np
import jax
import jax.numpy as jnp
from jax.experimental import pallas as pl
from jax.experimental.pallas import tpu as pltpu


# ----------------------------------------------------------------------------
# Standard JPEG chrominance quantization table (same values the DiffJPEG
# module registers as `c_table`).
# ----------------------------------------------------------------------------
def make_c_table() -> np.ndarray:
    c = np.empty((8, 8), dtype=np.float32)
    c.fill(99.0)
    c[:4, :4] = np.array(
        [[17, 18, 24, 47],
         [18, 21, 26, 66],
         [24, 26, 56, 99],
         [26, 66, 99, 99]], dtype=np.float32).T
    return c


LANES = 512           # 8 blocks x 64 coeffs per row -> lane-dense multiple of 128
MAX_TILE_ROWS = 512   # (512, 512) f32 tile = 1 MiB; ~4.5 MiB with double buffering


# ----------------------------------------------------------------------------
# Pallas kernel: out = round(img / q), q = c_table * factor tiled along lanes.
# ----------------------------------------------------------------------------
def _c_quantize_kernel(q_ref, img_ref, out_ref):
    # q_ref: (1, LANES) precomputed divisor; img_ref/out_ref: (TILE_ROWS, LANES).
    # jnp.round == round-half-to-even, matching torch.round.
    out_ref[...] = jnp.round(img_ref[...] / q_ref[...])


def c_quantize(image: jax.Array, factor: float = 1.0) -> jax.Array:
    """image: (B, N, 8, 8) -> (B, N, 8, 8) float32, round(image / (c_table*factor))."""
    B, N, H, W = image.shape
    assert (H, W) == (8, 8), "expects 8x8 JPEG blocks"
    total = B * N * 64

    # Flatten to a lane-dense 2D slab (rows, 512).  Block boundaries (64 elems)
    # always align inside a 512-wide row, so lane%64 indexes the table.
    flat = image.reshape(-1).astype(jnp.float32)
    rows = pl.cdiv(total, LANES)

    # Tile rows: as large as MAX_TILE_ROWS, but never more than the (8-rounded)
    # row count for tiny inputs.  Pad rows so the grid divides exactly.
    tile_rows = min(MAX_TILE_ROWS, ((rows + 7) // 8) * 8)
    padded_rows = tile_rows * pl.cdiv(rows, tile_rows)
    pad = padded_rows * LANES - total
    if pad:
        flat = jnp.concatenate([flat, jnp.zeros((pad,), jnp.float32)])
    img2d = flat.reshape(padded_rows, LANES)

    # Divisor built once in XLA: c_table flattened, repeated 8x along lanes,
    # scaled by factor.  Passed as a tiny (1, 512) constant-index block.
    table_lane = np.tile(make_c_table().reshape(1, 64), (1, LANES // 64))
    q2d = jnp.asarray(table_lane, dtype=jnp.float32) * jnp.float32(factor)

    out2d = pl.pallas_call(
        _c_quantize_kernel,
        out_shape=jax.ShapeDtypeStruct((padded_rows, LANES), jnp.float32),
        grid=(padded_rows // tile_rows,),
        in_specs=[
            pl.BlockSpec((1, LANES), lambda i: (0, 0)),            # divisor table
            pl.BlockSpec((tile_rows, LANES), lambda i: (i, 0)),    # image rows
        ],
        out_specs=pl.BlockSpec((tile_rows, LANES), lambda i: (i, 0)),
        compiler_params=pltpu.CompilerParams(
            dimension_semantics=("parallel",)),
    )(q2d, img2d)

    out_flat = out2d.reshape(-1)
    if pad:
        out_flat = out_flat[:total]
    # Output stays f32 to preserve the PyTorch forward contract.
    return out_flat.reshape(B, N, 8, 8)


# ----------------------------------------------------------------------------
# Pure-JAX reference for correctness checking.
# ----------------------------------------------------------------------------
def c_quantize_ref(image: jax.Array, factor: float = 1.0) -> jax.Array:
    table = jnp.asarray(make_c_table())
    return jnp.round(image.astype(jnp.float32) / (table * factor))


if __name__ == "__main__":
    key = jax.random.PRNGKey(0)

    # Case 1: batch=2, 16 blocks of 8x8 per item (e.g. a 32x32 chroma plane).
    k1, k2 = jax.random.split(key)
    img1 = jax.random.uniform(k1, (2, 16, 8, 8), dtype=jnp.float32,
                              minval=-256.0, maxval=256.0)
    out1 = c_quantize(img1, 1.0)
    jax.block_until_ready(out1)
    np.testing.assert_allclose(np.asarray(out1),
                               np.asarray(c_quantize_ref(img1, 1.0)), atol=1e-5)

    # Case 2: odd block count (exercises the padding path) and factor != 1.
    img2 = jax.random.uniform(k2, (1, 3, 8, 8), dtype=jnp.float32,
                              minval=-256.0, maxval=256.0)
    out2 = c_quantize(img2, 2.0)
    jax.block_until_ready(out2)
    np.testing.assert_allclose(np.asarray(out2),
                               np.asarray(c_quantize_ref(img2, 2.0)), atol=1e-5)

    print("KERNEL_OK")
</pallas_src>

<mosaic_0001>
module attributes {stable_mosaic.version = 11 : i64} {
  func.func @_c_quantize_kernel(%arg0: i32, %arg1: memref<1x512xf32, #tpu.memory_space<vmem>>, %arg2: memref<8x512xf32, #tpu.memory_space<vmem>>, %arg3: memref<8x512xf32, #tpu.memory_space<vmem>>) attributes {dimension_semantics = [#tpu.dimension_semantics<parallel>], iteration_bounds = array<i64: 1>, scalar_prefetch = 0 : i64, scratch_operands = 0 : i64, tpu.core_type = #tpu.core_type<tc>, window_params = [{pipeline_mode = #tpu.pipeline_mode<synchronous>, transform_indices = @transform_0, window_bounds = array<i64: 1, 512>}, {transform_indices = @transform_1, window_bounds = array<i64: 8, 512>}, {transform_indices = @transform_2, window_bounds = array<i64: 8, 512>}]} {
    %c0 = arith.constant 0 : index
    %c0_0 = arith.constant 0 : index
    %0 = vector.load %arg2[%c0, %c0_0] : memref<8x512xf32, #tpu.memory_space<vmem>>, vector<8x512xf32>
    %c0_1 = arith.constant 0 : index
    %c0_2 = arith.constant 0 : index
    %1 = vector.load %arg1[%c0_1, %c0_2] : memref<1x512xf32, #tpu.memory_space<vmem>>, vector<1x512xf32>
    %2 = vector.broadcast %1 : vector<1x512xf32> to vector<8x512xf32>
    %3 = arith.divf %0, %2 : vector<8x512xf32>
    %4 = math.roundeven %3 : vector<8x512xf32>
    %c0_3 = arith.constant 0 : index
    %c0_4 = arith.constant 0 : index
    %5 = vector.load %arg3[%c0_3, %c0_4] : memref<8x512xf32, #tpu.memory_space<vmem>>, vector<8x512xf32>
    tpu.vector_store %arg3[%c0_3, %c0_4], %4 {strides = array<i32>} : memref<8x512xf32, #tpu.memory_space<vmem>>, vector<8x512xf32>,
    return
  }
  func.func @transform_0(%arg0: i32) -> (i32, i32) {
    %c0_i32 = arith.constant 0 : i32
    %c0_i32_0 = arith.constant 0 : i32
    %c0_i32_1 = arith.constant 0 : i32
    return %c0_i32, %c0_i32_0 : i32, i32
  }
  func.func @transform_1(%arg0: i32) -> (i32, i32) {
    %c0_i32 = arith.constant 0 : i32
    %c0_i32_0 = arith.constant 0 : i32
    return %arg0, %c0_i32 : i32, i32
  }
  func.func @transform_2(%arg0: i32) -> (i32, i32) {
    %c0_i32 = arith.constant 0 : i32
    %c0_i32_0 = arith.constant 0 : i32
    return %arg0, %c0_i32 : i32, i32
  }
}

</mosaic_0001>

<bundles_post_ra>
// kernel: tpu_custom_call.1
= control target key start
LH: loop header
LB: loop body
LE: loop exit
PB: predicated region body
PF: predicated region fallthrough
CT: control target
= control target key end

     0   :  { %7 = vsyncpa [#allocation3], 0  ;;  %s235_s0 = inlined_call_operand.hbm [shape: f32[1,512], index: 0, kind: input, shape index: {}]   ;;  %s236_s1 = inlined_call_operand.hbm [shape: f32[8,512], index: 1, kind: input, shape index: {}]   ;;  %s237_s2 = inlined_call_operand.hbm [shape: f32[8,512], index: 2, kind: output, shape index: {}]  }
   0x1   :  { %8 = vsyncpa [#allocation6], 0 }
   0x2   :  { %9 = vsyncpa [#allocation4], 0  ;;  %s181_s9 = smov [#allocation2]   ;;  %s182_s11 = smov [#allocation5]  }
   0x3   :  { %s16_s10 = sshll.u32 %s181_s9, 4  ;;  %s26_s12 = sshll.u32 %s182_s11, 4  ;;  %s17_s10 = int_to_ptr.vmem [resolvable:$true] %s16_s10  ;;  %s27_s12 = int_to_ptr.vmem [resolvable:$true] %s26_s12 }
   0x4   :  { %s109_s15 = scalar_lea.hbm %s235_s0, 64 }
   0x5   :  { %p110_p0 = scmp.ne.s32.totalorder %s235_s0, %s109_s15  ;;  %p113_p1 = scmp.lt.u32.totalorder %s109_s15, %s235_s0 }
   0x7   :  { %p115_p2 = pnand %p113_p1, %p110_p0 }
   0x9   :  { %118 = shalt.err (!%p115_p2)
}
   0xa   :  { %s119_s20 = scalar_lea.vmem %s17_s10, 64  ;;  %p124_p4 = scmp.lt.s32.totalorder %s17_s10, %s17_s10 }
   0xb   :  { %p120_p3 = scmp.ne.s32.totalorder %s17_s10, %s119_s20  ;;  %p125_p5 = scmp.lt.s32.totalorder %s119_s20, %s119_s20 }
   0xd   :  { %p126_p6 = por %p125_p5, %p124_p4 }
   0xf   :  { %p127_p7 = pnand %p126_p6, %p120_p3 }
  0x11   :  { %130 = shalt.err (!%p127_p7)
}
  0x12   :  { %19 = dma.hbm_to_vmem [thread:$0]  %s235_s0, 64, %s17_s10, [#allocation3]  }
  0x13   :  { %s131_s25 = scalar_lea.hbm %s236_s1, 512 }
  0x14   :  { %p132_p8 = scmp.ne.s32.totalorder %s236_s1, %s131_s25  ;;  %p135_p9 = scmp.lt.u32.totalorder %s131_s25, %s236_s1 }
  0x16   :  { %p137_p10 = pnand %p135_p9, %p132_p8 }
  0x18   :  { %140 = shalt.err (!%p137_p10)
}
  0x19   :  { %s141_s30 = scalar_lea.vmem %s27_s12, 512  ;;  %p146_p12 = scmp.lt.s32.totalorder %s27_s12, %s27_s12 }
  0x1a   :  { %p142_p11 = scmp.ne.s32.totalorder %s27_s12, %s141_s30  ;;  %p147_p13 = scmp.lt.s32.totalorder %s141_s30, %s141_s30 }
  0x1c   :  { %p148_p0 = por %p147_p13, %p146_p12 }
  0x1e   :  { %p149_p1 = pnand %p148_p0, %p142_p11 }
  0x20   :  { %152 = shalt.err (!%p149_p1)
}
  0x21   :  { %29 = dma.hbm_to_vmem [thread:$0]  %s236_s1, 512, %s27_s12, [#allocation6]  }
  0x22   :  { %175 = dma.done.wait [#allocation3], 64  }
  0x23   :  { %176 = vsyncadd [#allocation3], 4294967232 }
  0x24   :  { %177 = dma.done.wait [#allocation6], 512  }
  0x25   :  { %178 = vsyncadd [#allocation6], 4294966784  ;;  %v42_v0 = vlaneseq  ;;  %v40_v6 = vld [vmem:[#allocation2] sm:$0xf]  ;;  %v36_v11 = vld [vmem:[#allocation5] sm:$0xff]  ;;  %s183_s1 = smov [#allocation7]  }
  0x26   :  { %v37_v12 = vld [vmem:[#allocation5 + $0x8] sm:$0xff]  ;;  %v38_v14 = vld [vmem:[#allocation5 + $0x10] sm:$0xff]  ;;  %v39_v17 = vld [vmem:[#allocation5 + $0x18] sm:$0xff]  ;;  %s84_s4 = sshll.u32 %s183_s1, 4  ;;  %s85_s4 = int_to_ptr.vmem [resolvable:$true] %s84_s4 }
  0x27   :  { %v43_v1 = vshrl.u32 %v42_v0, 7  ;;  %s153_s5 = scalar_lea.vmem %s85_s4, 512  ;;  %p158_p3 = scmp.lt.s32.totalorder %s85_s4, %s85_s4 }
  0x28   :  { %p154_p2 = scmp.ne.s32.totalorder %s85_s4, %s153_s5  ;;  %p159_p4 = scmp.lt.s32.totalorder %s153_s5, %s153_s5 }
  0x29   :  { %v44_v2 = vsub.s32 0, %v43_v1  ;;  %v48_v3 = vsub.s32 1, %v43_v1  ;;  %v52_v4 = vsub.s32 2, %v43_v1  ;;  %v56_v5 = vsub.s32 3, %v43_v1 }
  0x2a   :  { %p160_p5 = por %p159_p4, %p158_p3 }
  0x2b   :  { %v45_v7 = vrot.slane %v40_v6, %v44_v2  ;;  %v49_v8 = vrot.slane %v40_v6, %v48_v3  ;;  %v53_v9 = vrot.slane %v40_v6, %v52_v4  ;;  %v57_v10 = vrot.slane %v40_v6, %v56_v5 }
  0x2c   :  { %p161_p6 = pnand %p160_p5, %p154_p2 }
  0x2d   :  { %101 = vrcp.f32 %v45_v7 }
  0x2e   :  { %103 = vrcp.f32 %v49_v8 }
  0x2f   :  { %105 = vrcp.f32 %v53_v9 }
  0x30   :  { %107 = vrcp.f32 %v57_v10 }
  0x37   :  { %v102_v13 = vpop.eup %101 }
  0x38   :  { %v104_v15 = vpop.eup %103  ;;  %v63_v16 = vmul.f32 %v102_v13, %v36_v11 }
  0x39   :  { %v106_v18 = vpop.eup %105  ;;  %v65_v19 = vmul.f32 %v104_v15, %v37_v12 }
  0x3a   :  { %v108_v20 = vpop.eup %107  ;;  %v94_v21 = vround.rtne.f32 %v63_v16  ;;  %v67_v22 = vmul.f32 %v106_v18, %v38_v14 }
  0x3b   :  { %v95_v23 = vround.rtne.f32 %v65_v19  ;;  %v69_v24 = vmul.f32 %v108_v20, %v39_v17 }
  0x3c   :  { %74 = vst [vmem:[#allocation7] sm:$0xff] %v94_v21  ;;  %v96_v25 = vround.rtne.f32 %v67_v22 }
  0x3d   :  { %75 = vst [vmem:[#allocation7 + $0x8] sm:$0xff] %v95_v23  ;;  %v97_v26 = vround.rtne.f32 %v69_v24 }
  0x3e   :  { %76 = vst [vmem:[#allocation7 + $0x10] sm:$0xff] %v96_v25 }
  0x3f   :  { %77 = vst [vmem:[#allocation7 + $0x18] sm:$0xff] %v97_v26 }
  0x40   :  { %164 = shalt.err (!%p161_p6)
}
  0x41   :  { %s165_s8 = scalar_lea.hbm %s237_s2, 512 }
  0x42   :  { %p166_p7 = scmp.ne.s32.totalorder %s237_s2, %s165_s8  ;;  %p169_p8 = scmp.lt.u32.totalorder %s165_s8, %s237_s2 }
  0x44   :  { %p171_p9 = pnand %p169_p8, %p166_p7 }
  0x46   :  { %174 = shalt.err (!%p171_p9)
}
  0x47   :  { %87 = dma.vmem_to_hbm [thread:$0]  %s85_s4, 512, %s237_s2, [#allocation4]  }
  0x48   :  { %179 = dma.done.wait [#allocation4], 512  }
  0x49   :  { %180 = vsyncadd [#allocation4], 4294966784 }
  0x4a   :  { %91 = vsyncpa [#allocation3], 1 }
  0x4b   :  { %92 = vsyncpa [#allocation6], 1 }
  0x4c   :  { %93 = vsyncpa [#allocation4], 1 }

</bundles_post_ra>
